<compile_context>
chip_gen: v5e
topology: v5e:2x2
jax: 0.10.0
libtpu: 0.0.40
codegen_flags: <defaults>
</compile_context>

<pallas_src>
import functools

import jax
import jax.numpy as jnp
from jax.experimental import pallas as pl
from jax.experimental.pallas import tpu as pltpu

_LANE = 128
_SUBLANE = 8


def _round_up(x, m):
    return (x + m - 1) // m * m


def _choose_tiles(seq_len, width, gran, target_elems):
    """Pick a sequence-tile size (multiple of `gran`) of ~target_elems f32 elems."""
    ts = max(gran, (target_elems // width) // gran * gran)
    ts = min(ts, _round_up(seq_len, gran))
    # v7x megacore: prefer >= 2 grid steps so the "parallel" axis feeds both TCs.
    if _round_up(seq_len, ts) // ts < 2 and seq_len > gran:
        ts = _round_up(seq_len, 2 * gran) // 2          # still a multiple of gran
    padded_seq = _round_up(seq_len, ts)
    return ts, padded_seq, padded_seq // ts


def _vmem_limit_bytes(tile_out_bytes):
    # 2 outputs x 2 pipeline buffers each + headroom for the tiny (1, w) inputs.
    need = 4 * tile_out_bytes + (2 << 20)
    return int(min(max(need, 16 << 20), 64 << 20))


def _rope_lane_dense_kernel(step_ref, phase_ref, cos_ref, sin_ref, *, rows_per_tile):
    # Lane-dense flat layout: flat index f = position*dim + d maps to
    # (row = f // 128, lane = f % 128).  All lane math is precomputed:
    #   step_row[lane]  = k * inv_full[lane % dim]
    #   phase_row[lane] = (lane // dim) * inv_full[lane % dim]
    # so freqs = global_row * step_row + phase_row.
    step = step_ref[...]
    base = (pl.program_id(0) * rows_per_tile).astype(jnp.float32)
    offset = base * step + phase_ref[...]                       # (1, 128), once/step
    row_f = jax.lax.broadcasted_iota(
        jnp.int32, (rows_per_tile, _LANE), 0).astype(jnp.float32)
    freqs = row_f * step + offset
    cos_ref[...] = jnp.cos(freqs)
    sin_ref[...] = jnp.sin(freqs)


def _rope_row_kernel(freq_row_ref, cos_ref, sin_ref, *, ts, duplicate):
    # freq_row_ref: (1, w).  duplicate=True  -> w = dim//2 (half % 128 == 0),
    #                                            compute on half, two unmasked stores.
    #               duplicate=False -> w = dim (inv_freq already duplicated in the
    #                                            wrapper), single store.
    w = freq_row_ref.shape[-1]
    freq_row = freq_row_ref[...]
    base = (pl.program_id(0) * ts).astype(jnp.float32)
    offset = base * freq_row                                    # (1, w), once/step
    t = jax.lax.broadcasted_iota(jnp.int32, (ts, w), 0).astype(jnp.float32)
    freqs = t * freq_row + offset
    c = jnp.cos(freqs)
    s = jnp.sin(freqs)
    if duplicate:
        cos_ref[:, :w] = c
        cos_ref[:, w:] = c
        sin_ref[:, :w] = s
        sin_ref[:, w:] = s
    else:
        cos_ref[...] = c
        sin_ref[...] = s


def glm_rotary_embedding(x, dim, base=10000.0, seq_dim=1, seq_len=None):
    """Returns (cos_cached, sin_cached) with shape (seq_len, 1, dim), float32."""
    if seq_len is None:
        seq_len = x.shape[seq_dim]
    if dim % 2 != 0:
        raise ValueError("rotary dim must be even")
    half = dim // 2
    inv_freq = 1.0 / (base ** (jnp.arange(0, dim, 2, dtype=jnp.float32) / dim))

    # ~4 MiB of f32 per output tile -> 2 outputs x 2 pipeline buffers ~= 16 MiB VMEM.
    target_elems = 1024 * 1024

    lane_dense = (dim < _LANE) and (_LANE % dim == 0)

    if lane_dense:
        # Flat (seq*dim/128, 128) slab: full 128-lane utilization for EUP/stores.
        k = _LANE // dim                       # positions packed per 128-lane row
        gran = _SUBLANE * k                    # tile granularity in positions
        ts, padded_seq, num_tiles = _choose_tiles(seq_len, dim, gran, target_elems)
        rows_per_tile = ts // k
        total_rows = padded_seq // k

        inv_full = jnp.concatenate([inv_freq, inv_freq])            # (dim,)
        pattern = jnp.tile(inv_full, k)                              # (128,)
        step_row = (k * pattern).reshape(1, _LANE)
        lane = jnp.arange(_LANE)
        phase_row = ((lane // dim).astype(jnp.float32) * pattern).reshape(1, _LANE)

        tile_bytes = rows_per_tile * _LANE * 4
        kernel = functools.partial(_rope_lane_dense_kernel,
                                   rows_per_tile=rows_per_tile)
        cos_flat, sin_flat = pl.pallas_call(
            kernel,
            out_shape=(
                jax.ShapeDtypeStruct((total_rows, _LANE), jnp.float32),
                jax.ShapeDtypeStruct((total_rows, _LANE), jnp.float32),
            ),
            grid=(num_tiles,),
            in_specs=[pl.BlockSpec((1, _LANE), lambda i: (0, 0)),
                      pl.BlockSpec((1, _LANE), lambda i: (0, 0))],
            out_specs=(
                pl.BlockSpec((rows_per_tile, _LANE), lambda i: (i, 0)),
                pl.BlockSpec((rows_per_tile, _LANE), lambda i: (i, 0)),
            ),
            compiler_params=pltpu.CompilerParams(
                dimension_semantics=("parallel",),
                vmem_limit_bytes=_vmem_limit_bytes(tile_bytes),
            ),
            cost_estimate=pl.CostEstimate(
                flops=2 * padded_seq * dim,
                transcendentals=2 * padded_seq * dim,
                bytes_accessed=2 * padded_seq * dim * 4,
            ),
        )(step_row, phase_row)
        cos2d = cos_flat.reshape(padded_seq, dim)[:seq_len]
        sin2d = sin_flat.reshape(padded_seq, dim)[:seq_len]
    else:
        # duplicate=True only when both stores are unmasked (half % 128 == 0);
        # dim == 128 / 192 / other fall into the full-width single-store path.
        duplicate = (half % _LANE == 0)
        w = half if duplicate else dim
        if duplicate:
            freq_row = inv_freq.reshape(1, half)
        else:
            freq_row = jnp.concatenate([inv_freq, inv_freq]).reshape(1, dim)

        ts, padded_seq, num_tiles = _choose_tiles(seq_len, dim, _SUBLANE,
                                                  target_elems)
        tile_bytes = ts * dim * 4
        kernel = functools.partial(_rope_row_kernel, ts=ts, duplicate=duplicate)
        cos2d, sin2d = pl.pallas_call(
            kernel,
            out_shape=(
                jax.ShapeDtypeStruct((padded_seq, dim), jnp.float32),
                jax.ShapeDtypeStruct((padded_seq, dim), jnp.float32),
            ),
            grid=(num_tiles,),
            in_specs=[pl.BlockSpec((1, w), lambda i: (0, 0))],
            out_specs=(
                pl.BlockSpec((ts, dim), lambda i: (i, 0)),
                pl.BlockSpec((ts, dim), lambda i: (i, 0)),
            ),
            compiler_params=pltpu.CompilerParams(
                dimension_semantics=("parallel",),
                vmem_limit_bytes=_vmem_limit_bytes(tile_bytes),
            ),
            cost_estimate=pl.CostEstimate(
                flops=2 * padded_seq * dim,
                transcendentals=(1 if duplicate else 2) * padded_seq * dim,
                bytes_accessed=2 * padded_seq * dim * 4,
            ),
        )(freq_row)
        cos2d = cos2d[:seq_len]
        sin2d = sin2d[:seq_len]

    # [:, None, :] — pure glue reshape outside the kernel.
    return cos2d.reshape(seq_len, 1, dim), sin2d.reshape(seq_len, 1, dim)


def _reference(seq_len, dim, base=10000.0):
    inv_freq = 1.0 / (base ** (jnp.arange(0, dim, 2, dtype=jnp.float32) / dim))
    t = jnp.arange(seq_len, dtype=jnp.float32)
    freqs = jnp.einsum("i,j->ij", t, inv_freq)
    emb = jnp.concatenate([freqs, freqs], axis=-1)
    return jnp.cos(emb)[:, None, :], jnp.sin(emb)[:, None, :]


if __name__ == "__main__":
    key = jax.random.PRNGKey(0)
    batch, seq, hidden = 2, 8, 32    # x.shape[seq_dim=1] -> seq_len = 8 by default
    x = jax.random.normal(key, (batch, seq, hidden), dtype=jnp.float32)

    # (dim, explicit seq_len) cases:
    #  dim=32  -> lane-dense flat-slab path
    #  dim=128 -> full-width single-store path (new dispatch)
    #  dim=256 -> half-width compute, two unmasked 128-lane stores
    #  seq_len=40 cases exercise padding + the >=2-tile (megacore) split.
    for dim, slen in ((32, None), (128, None), (256, None), (32, 40), (128, 40)):
        cos_c, sin_c = glm_rotary_embedding(x, dim=dim, seq_len=slen)
        cos_c, sin_c = jax.block_until_ready((cos_c, sin_c))
        eff = seq if slen is None else slen
        cos_r, sin_r = _reference(eff, dim)
        assert cos_c.shape == (eff, 1, dim) and sin_c.shape == (eff, 1, dim)
        assert jnp.allclose(cos_c, cos_r, atol=1e-4, rtol=1e-5), (dim, slen)
        assert jnp.allclose(sin_c, sin_r, atol=1e-4, rtol=1e-5), (dim, slen)

    print("KERNEL_OK")
</pallas_src>

<mosaic_0001>
module attributes {stable_mosaic.version = 11 : i64} {
  func.func @_rope_lane_dense_kernel(%arg0: i32, %arg1: memref<1x128xf32, #tpu.memory_space<vmem>>, %arg2: memref<1x128xf32, #tpu.memory_space<vmem>>, %arg3: memref<8x128xf32, #tpu.memory_space<vmem>>, %arg4: memref<8x128xf32, #tpu.memory_space<vmem>>) attributes {dimension_semantics = [#tpu.dimension_semantics<parallel>], iteration_bounds = array<i64: 1>, scalar_prefetch = 0 : i64, scratch_operands = 0 : i64, tpu.core_type = #tpu.core_type<tc>, window_params = [{pipeline_mode = #tpu.pipeline_mode<synchronous>, transform_indices = @transform_0, window_bounds = array<i64: 1, 128>}, {pipeline_mode = #tpu.pipeline_mode<synchronous>, transform_indices = @transform_1, window_bounds = array<i64: 1, 128>}, {transform_indices = @transform_2, window_bounds = array<i64: 8, 128>}, {transform_indices = @transform_3, window_bounds = array<i64: 8, 128>}]} {
    %c0 = arith.constant 0 : index
    %c0_0 = arith.constant 0 : index
    %0 = vector.load %arg1[%c0, %c0_0] : memref<1x128xf32, #tpu.memory_space<vmem>>, vector<1x128xf32>
    %c8_i32 = arith.constant 8 : i32
    %1 = arith.muli %arg0, %c8_i32 : i32
    %2 = arith.sitofp %1 : i32 to f32
    %3 = vector.broadcast %2 : f32 to vector<1x128xf32>
    %4 = arith.mulf %3, %0 : vector<1x128xf32>
    %c0_1 = arith.constant 0 : index
    %c0_2 = arith.constant 0 : index
    %5 = vector.load %arg2[%c0_1, %c0_2] : memref<1x128xf32, #tpu.memory_space<vmem>>, vector<1x128xf32>
    %6 = arith.addf %4, %5 : vector<1x128xf32>
    %7 = tpu.iota {dimensions = array<i32: 0>} : vector<8x128xi32>
    %8 = arith.sitofp %7 : vector<8x128xi32> to vector<8x128xf32>
    %9 = vector.broadcast %0 : vector<1x128xf32> to vector<8x128xf32>
    %10 = arith.mulf %8, %9 : vector<8x128xf32>
    %11 = vector.broadcast %6 : vector<1x128xf32> to vector<8x128xf32>
    %12 = arith.addf %10, %11 : vector<8x128xf32>
    %13 = math.cos %12 : vector<8x128xf32>
    %c0_3 = arith.constant 0 : index
    %c0_4 = arith.constant 0 : index
    %14 = vector.load %arg3[%c0_3, %c0_4] : memref<8x128xf32, #tpu.memory_space<vmem>>, vector<8x128xf32>
    tpu.vector_store %arg3[%c0_3, %c0_4], %13 {strides = array<i32>} : memref<8x128xf32, #tpu.memory_space<vmem>>, vector<8x128xf32>,
    %15 = math.sin %12 : vector<8x128xf32>
    %c0_5 = arith.constant 0 : index
    %c0_6 = arith.constant 0 : index
    %16 = vector.load %arg4[%c0_5, %c0_6] : memref<8x128xf32, #tpu.memory_space<vmem>>, vector<8x128xf32>
    tpu.vector_store %arg4[%c0_5, %c0_6], %15 {strides = array<i32>} : memref<8x128xf32, #tpu.memory_space<vmem>>, vector<8x128xf32>,
    return
  }
  func.func @transform_0(%arg0: i32) -> (i32, i32) {
    %c0_i32 = arith.constant 0 : i32
    %c0_i32_0 = arith.constant 0 : i32
    %c0_i32_1 = arith.constant 0 : i32
    return %c0_i32, %c0_i32_0 : i32, i32
  }
  func.func @transform_1(%arg0: i32) -> (i32, i32) {
    %c0_i32 = arith.constant 0 : i32
    %c0_i32_0 = arith.constant 0 : i32
    %c0_i32_1 = arith.constant 0 : i32
    return %c0_i32, %c0_i32_0 : i32, i32
  }
  func.func @transform_2(%arg0: i32) -> (i32, i32) {
    %c0_i32 = arith.constant 0 : i32
    %c0_i32_0 = arith.constant 0 : i32
    return %arg0, %c0_i32 : i32, i32
  }
  func.func @transform_3(%arg0: i32) -> (i32, i32) {
    %c0_i32 = arith.constant 0 : i32
    %c0_i32_0 = arith.constant 0 : i32
    return %arg0, %c0_i32 : i32, i32
  }
}

</mosaic_0001>

<bundles_post_ra>
// kernel: tpu_custom_call.1
= control target key start
LH: loop header
LB: loop body
LE: loop exit
PB: predicated region body
PF: predicated region fallthrough
CT: control target
= control target key end

     0   :  { %9 = vsyncpa [#allocation3], 0  ;;  %s618_s0 = inlined_call_operand.hbm [shape: f32[1,128], index: 0, kind: input, shape index: {}]   ;;  %s619_s1 = inlined_call_operand.hbm [shape: f32[1,128], index: 1, kind: input, shape index: {}]   ;;  %s620_s2 = inlined_call_operand.hbm [shape: f32[8,128], index: 2, kind: output, shape index: {0}]   ;;  %s621_s3 = inlined_call_operand.hbm [shape: f32[8,128], index: 3, kind: output, shape index: {1}]  }
   0x1   :  { %10 = vsyncpa [#allocation6], 0 }
   0x2   :  { %11 = vsyncpa [#allocation4], 0 }
   0x3   :  { %12 = vsyncpa [#allocation9], 0  ;;  %s18_s14 = sshll.u32 %s618_s0, 4  ;;  %s528_s15 = smov [#allocation2]   ;;  %s19_s14 = int_to_ptr.hbm [resolvable:$true] %s18_s14 }
   0x4   :  { %s20_s16 = sshll.u32 %s528_s15, 4  ;;  %s29_s19 = sshll.u32 %s619_s1, 4  ;;  %s21_s16 = int_to_ptr.vmem [resolvable:$true] %s20_s16  ;;  %s30_s19 = int_to_ptr.hbm [resolvable:$true] %s29_s19 }
   0x5   :  { %23 = dma.hbm_to_vmem [thread:$0]  %s19_s14, 16, %s21_s16, [#allocation3]  }
   0x6   :  { %s529_s20 = smov [#allocation5]  }
   0x7   :  { %s31_s21 = sshll.u32 %s529_s20, 4  ;;  %s32_s21 = int_to_ptr.vmem [resolvable:$true] %s31_s21 }
   0x8   :  { %34 = dma.hbm_to_vmem [thread:$0]  %s30_s19, 16, %s32_s21, [#allocation6]  }
   0x9   :  { %520 = dma.done.wait [#allocation3], 16  }
   0xa   :  { %521 = vsyncadd [#allocation3], 4294967280 }
   0xb   :  { %522 = dma.done.wait [#allocation6], 16  }
   0xc   :  { %523 = vsyncadd [#allocation6], 4294967280  ;;  %v50_v0 = vlaneseq  ;;  %v43_v3 = vld [vmem:[#allocation2] sm:$0x1]  ;;  %v48_v4 = vld [vmem:[#allocation5] sm:$0x1] }
   0xd   :  { %v423_v5 = vld [vmem:[#allocation2] ss:$0 sm:$0xff]  ;;  %v47_v6 = vmul.f32 0.0, %v43_v3  ;;  %v530_v22 = vmov 683565275   ;;  %s537_s0 = smov [#allocation7]  }
   0xe   :  { %v51_v1 = vshrl.u32 %v50_v0, 7  ;;  %v531_v24 = vmov 2475754826   ;;  %v532_v26 = vmov 2131351028   ;;  %s377_s1 = sshll.u32 %s537_s0, 4  ;;  %s378_s1 = int_to_ptr.vmem [resolvable:$true] %s377_s1 }
   0xf   :  { %v49_v7 = vadd.f32 %v48_v4, %v47_v6  ;;  %v533_v28 = vmov 2102212464   ;;  %v534_v30 = vmov 920167782   ;;  %v535_v36 = vmov 1326507024  }
  0x10   :  { %v52_v2 = vcvt.s32.f32 %v51_v1  ;;  %s379_s24 = sshll.u32 %s620_s2, 4  ;;  %s538_s25 = smov [#allocation8]   ;;  %s380_s24 = int_to_ptr.hbm [resolvable:$true] %s379_s24 }
  0x11   :  { %v58_v9 = vperm.slane %v49_v7, 0  ;;  %s388_s26 = sshll.u32 %s538_s25, 4  ;;  %s390_s29 = sshll.u32 %s621_s3, 4  ;;  %s389_s26 = int_to_ptr.vmem [resolvable:$true] %s388_s26  ;;  %s391_s29 = int_to_ptr.hbm [resolvable:$true] %s390_s29 }
  0x12   :  { %v56_v8 = vmul.f32 %v423_v5, %v52_v2 }
  0x14   :  { %v565_v10 = vadd.f32 %v58_v9, %v56_v8 }
  0x16   :  { %v64_v11 = vand.u32 2139095040, %v565_v10  ;;  %v61_v13 = vand.u32 2147483647, %v565_v10  ;;  %vm63_vm12 = vcmp.lt.s32.totalorder %v565_v10, 0 }
  0x18   :  { %v65_v12 = vshrl.u32 %v64_v11, 23  ;;  %v68_v16 = vand.u32 8388607, %v61_v13  ;;  %v536_v11 = vmov 0   ;;  %vm62_vm13 = vcmp.le.f32.partialorder %v61_v13, 0.7853982 }
  0x1a   :  { %v406_v14 = vadd.s32 4294967169, %v65_v12  ;;  %v69_v19 = vor.u32 8388608, %v68_v16 }
  0x1c   :  { %v71_v15 = vadd.s32 1, %v406_v14  ;;  %v574_v38 = vshll.u32 %v69_v19, 8 }
  0x1e   :  { %vm72_vm0 = vcmp.gt.s32.totalorder %v71_v15, 0  ;;  %v110_v50 = vand.u32 65535, %v574_v38  ;;  %v111_v51 = vshrl.u32 %v574_v38, 16 }
  0x1f   :  { %v73_v17 = vsel %vm72_vm0, %v71_v15, 0 }
  0x20   :  { %v75_v18 = vand.u32 31, %v73_v17  ;;  %v571_v20 = vshrl.u32 %v73_v17, 5 }
  0x22   :  { %v76_v21 = vsub.s32 32, %v75_v18  ;;  %v78_v23 = vshll.u32 %v530_v22, %v75_v18  ;;  %v81_v25 = vshll.u32 %v531_v24, %v75_v18  ;;  %v84_v27 = vshll.u32 %v532_v26, %v75_v18 }
  0x23   :  { %v87_v29 = vshll.u32 %v533_v28, %v75_v18  ;;  %v90_v31 = vshll.u32 %v534_v30, %v75_v18  ;;  %vm93_vm1 = vcmp.lt.s32.totalorder %v571_v20, 1  ;;  %vm96_vm2 = vcmp.lt.s32.totalorder %v571_v20, 4 }
  0x24   :  { %v79_v32 = vshrl.u32 %v531_v24, %v76_v21  ;;  %v82_v33 = vshrl.u32 %v532_v26, %v76_v21  ;;  %v85_v34 = vshrl.u32 %v533_v28, %v76_v21  ;;  %v88_v35 = vshrl.u32 %v534_v30, %v76_v21 }
  0x25   :  { %v91_v37 = vshrl.u32 %v535_v36, %v76_v21  ;;  %vm95_vm3 = vcmp.lt.s32.totalorder %v571_v20, 3  ;;  %vm94_vm4 = vcmp.lt.s32.totalorder %v571_v20, 2  ;;  %v77_v58 = vshrl.u32 %v530_v22, %v76_v21 }
  0x26   :  { %v80_v39 = vor.u32 %v79_v32, %v78_v23  ;;  %v83_v40 = vor.u32 %v82_v33, %v81_v25  ;;  %v86_v41 = vor.u32 %v85_v34, %v84_v27  ;;  %v89_v42 = vor.u32 %v88_v35, %v87_v29 }
  0x27   :  { %v92_v43 = vor.u32 %v91_v37, %v90_v31 }
  0x28   :  { %v101_v44 = vsel %vm93_vm1, %v80_v39, %v83_v40  ;;  %v105_v45 = vsel %vm93_vm1, %v83_v40, %v86_v41  ;;  %v102_v46 = vsel %vm96_vm2, %v89_v42, 920167782  ;;  %v97_v7 = vsel %vm93_vm1, %v77_v58, %v80_v39 }
  0x29   :  { %v106_v47 = vsel %vm96_vm2, %v92_v43, 1326507024  ;;  %v103_v48 = vsel %vm95_vm3, %v86_v41, %v102_v46  ;;  %v98_v9 = vsel %vm96_vm2, %v86_v41, 2102212464 }
  0x2a   :  { %v107_v49 = vsel %vm95_vm3, %v89_v42, %v106_v47  ;;  %v104_v52 = vsel %vm94_vm4, %v101_v44, %v103_v48  ;;  %v99_v22 = vsel %vm95_vm3, %v83_v40, %v98_v9 }
  0x2b   :  { %v108_v53 = vsel %vm94_vm4, %v105_v45, %v107_v49  ;;  %v134_v56 = vand.u32 65535, %v104_v52  ;;  %v135_v57 = vshrl.u32 %v104_v52, 16  ;;  %v100_v30 = vsel %vm94_vm4, %v97_v7, %v99_v22 }
  0x2c   :  { %v112_v54 = vand.u32 65535, %v108_v53  ;;  %v113_v55 = vshrl.u32 %v108_v53, 16  ;;  %v154_v34 = vmul.u32 %v574_v38, %v100_v30  ;;  %vm204_vm4 = vweird.f32 %v565_v10 }
  0x2d   :  { %v136_v62 = vmul.u32 %v134_v56, %v110_v50  ;;  %v137_v63 = vmul.u32 %v135_v57, %v110_v50  ;;  %v138_v0 = vmul.u32 %v134_v56, %v111_v51  ;;  %v139_v4 = vmul.u32 %v135_v57, %v111_v51 }
  0x2e   :  { %v114_v59 = vmul.u32 %v112_v54, %v110_v50  ;;  %v115_v60 = vmul.u32 %v113_v55, %v110_v50  ;;  %v116_v61 = vmul.u32 %v112_v54, %v111_v51  ;;  %v117_v1 = vmul.u32 %v113_v55, %v111_v51 }
  0x2f   :  { %v140_v5 = vshll.u32 %v137_v63, 16  ;;  %v142_v6 = vshll.u32 %v138_v0, 16  ;;  %v141_v19 = vshrl.u32 %v137_v63, 16  ;;  %v143_v26 = vshrl.u32 %v138_v0, 16 }
  0x30   :  { %v118_v2 = vshll.u32 %v115_v60, 16  ;;  %v120_v3 = vshll.u32 %v116_v61, 16  ;;  %v119_v15 = vshrl.u32 %v115_v60, 16  ;;  %v121_v23 = vshrl.u32 %v116_v61, 16 }
  0x31   :  { %vm144_vm6 = vc.u32 %v136_v62, %v140_v5  ;;  %v146_v14 = vadd.s32 %v140_v5, %v136_v62 }
  0x32   :  { %vm122_vm5 = vc.u32 %v114_v59, %v118_v2  ;;  %v124_v8 = vadd.s32 %v118_v2, %v114_v59  ;;  %v145_v17 = vsel %vm144_vm6, 1, %v536_v11 }
  0x33   :  { %v123_v12 = vsel %vm122_vm5, 1, %v536_v11  ;;  %v147_v21 = vadd.s32 %v145_v17, %v139_v4  ;;  %vm148_vm8 = vc.u32 %v146_v14, %v142_v6  ;;  %v150_v29 = vadd.s32 %v146_v14, %v142_v6 }
  0x34   :  { %v125_v16 = vadd.s32 %v123_v12, %v117_v1  ;;  %vm126_vm7 = vc.u32 %v124_v8, %v120_v3  ;;  %v149_v25 = vsel %vm148_vm8, 1, %v536_v11 }
  0x35   :  { %v127_v18 = vsel %vm126_vm7, 1, %v536_v11  ;;  %v151_v27 = vadd.s32 %v149_v25, %v147_v21 }
  0x36   :  { %v129_v24 = vadd.s32 %v127_v18, %v125_v16 }
  0x37   :  { %v152_v31 = vadd.s32 %v151_v27, %v141_v19 }
  0x38   :  { %v130_v28 = vadd.s32 %v129_v24, %v119_v15 }
  0x39   :  { %v153_v33 = vadd.s32 %v152_v31, %v143_v26 }
  0x3a   :  { %v131_v32 = vadd.s32 %v130_v28, %v121_v23 }
  0x3b   :  { %v157_v35 = vadd.s32 1, %v153_v33 }
  0x3c   :  { %vm156_vm9 = vc.u32 %v131_v32, %v150_v29  ;;  %v155_v20 = vadd.s32 %v150_v29, %v131_v32 }
  0x3d   :  { %v158_v36 = vsel %vm156_vm9, %v157_v35, %v153_v33 }
  0x3e   :  { %v159_v37 = vadd.s32 %v158_v36, %v154_v34 }
  0x40   :  { %v160_v39 = vadd.s32 536870912, %v159_v37 }
  0x42   :  { %v161_v40 = vshrl.u32 %v160_v39, 30 }
  0x44   :  { %v162_v41 = vshll.u32 %v161_v40, 30  ;;  %v185_v58 = vsub.s32 4, %v161_v40 }
  0x46   :  { %v163_v42 = vsub.s32 %v159_v37, %v162_v41  ;;  %v186_v61 = vsel %vm63_vm12, %v185_v58, %v161_v40 }
  0x47   :  { %v188_v0 = vsel %vm62_vm13, 0, %v186_v61 }
  0x48   :  { %vm164_vm10 = vcmp.lt.s32.totalorder %v163_v42, 0  ;;  %v165_v43 = vsub.s32 0, %v163_v42  ;;  %v360_v5 = vadd.s32 3, %v188_v0  ;;  %v205_v11 = vand.u32 3, %v188_v0 }
  0x4a   :  { %v166_v44 = vsel %vm164_vm10, %v165_v43, %v163_v42  ;;  %v361_v12 = vand.u32 3, %v360_v5  ;;  %vm210_vm14 = vcmp.eq.s32.totalorder %v205_v11, 2  ;;  %vm206_vm0 = vcmp.lt.s32.totalorder %v205_v11, 2 }
  0x4b   :  { %v167_v45 = vclz %v166_v44  ;;  %vm207_vm1 = vcmp.eq.s32.totalorder %v205_v11, 0 }
  0x4c   :  { %vm366_vm15 = vcmp.eq.s32.totalorder %v361_v12, 2  ;;  %vm363_vm2 = vcmp.eq.s32.totalorder %v361_v12, 0  ;;  %vm362_vm3 = vcmp.lt.s32.totalorder %v361_v12, 2 }
  0x4d   :  { %v407_v46 = vadd.s32 4294967294, %v167_v45 }
  0x4f   :  { %vm408_vm11 = vcmp.lt.s32.totalorder %v407_v46, 0 }
  0x50   :  { %v170_v47 = vsel %vm408_vm11, 0, %v407_v46 }
  0x51   :  { %v171_v48 = vsub.s32 32, %v170_v47  ;;  %v172_v49 = vshll.u32 %v163_v42, %v170_v47  ;;  %v175_v50 = vsub.s32 4294967266, %v170_v47 }
  0x53   :  { %v173_v38 = vshrl.u32 %v155_v20, %v171_v48  ;;  %v176_v51 = vadd.s32 127, %v175_v50 }
  0x55   :  { %v174_v52 = vor.u32 %v173_v38, %v172_v49  ;;  %v177_v53 = vshll.u32 %v176_v51, 23 }
  0x57   :  { %v178_v54 = vor.u32 4788187, %v177_v53  ;;  %v181_v55 = vcvt.s32.f32 %v174_v52 }
  0x59   :  { %v179_v56 = vand.u32 2147483647, %v178_v54 }
  0x5b   :  { %v182_v57 = vmul.f32 %v181_v55, %v179_v56 }
  0x5d   :  { %v183_v59 = vxor.u32 2147483648, %v182_v57 }
  0x5f   :  { %v184_v60 = vsel %vm63_vm12, %v183_v59, %v182_v57 }
  0x60   :  { %v187_v62 = vsel %vm62_vm13, %v565_v10, %v184_v60 }
  0x61   :  { %v189_v63 = vmul.f32 %v187_v62, %v187_v62 }
  0x63   :  { %v190_v1 = vmul.f32 -0.001358992, %v189_v63  ;;  %v197_v2 = vmul.f32 -0.00019511016, %v189_v63 }
  0x65   :  { %v191_v3 = vadd.f32 0.041655596, %v190_v1  ;;  %v198_v4 = vadd.f32 0.008332121, %v197_v2 }
  0x67   :  { %v192_v6 = vmul.f32 %v191_v3, %v189_v63  ;;  %v199_v7 = vmul.f32 %v198_v4, %v189_v63 }
  0x69   :  { %v193_v8 = vadd.f32 -0.4999988, %v192_v6  ;;  %v200_v9 = vadd.f32 -0.16666654, %v199_v7 }
  0x6b   :  { %v194_v14 = vmul.f32 %v193_v8, %v189_v63  ;;  %v201_v13 = vmul.f32 %v200_v9, %v189_v63 }
  0x6d   :  { %v195_v15 = vadd.f32 1.0, %v194_v14  ;;  %v202_v16 = vadd.f32 1.0, %v201_v13 }
  0x6f   :  { %v203_v17 = vmul.f32 %v202_v16, %v187_v62  ;;  %v211_v18 = vxor.u32 2147483648, %v195_v15 }
  0x71   :  { %v208_v19 = vxor.u32 2147483648, %v203_v17  ;;  %v212_v21 = vsel %vm210_vm14, %v211_v18, %v203_v17  ;;  %v368_v22 = vsel %vm366_vm15, %v211_v18, %v203_v17 }
  0x73   :  { %v209_v23 = vsel %vm207_vm1, %v195_v15, %v208_v19  ;;  %v365_v24 = vsel %vm363_vm2, %v195_v15, %v208_v19 }
  0x74   :  { %v213_v25 = vsel %vm206_vm0, %v209_v23, %v212_v21  ;;  %v369_v26 = vsel %vm362_vm3, %v365_v24, %v368_v22 }
  0x75   :  { %v214_v27 = vsel %vm204_vm4, nan, %v213_v25  ;;  %v370_v28 = vsel %vm204_vm4, nan, %v369_v26 }
  0x76   :  { %215 = vst [vmem:[#allocation7] sm:$0xff] %v214_v27 }
  0x77   :  { %371 = vst [vmem:[#allocation8] sm:$0xff] %v370_v28  ;;  %382 = dma.vmem_to_hbm [thread:$0]  %s378_s1, 128, %s380_s24, [#allocation4]  }
  0x78   :  { %393 = dma.vmem_to_hbm [thread:$0]  %s389_s26, 128, %s391_s29, [#allocation9]  }
  0x79   :  { %524 = dma.done.wait [#allocation4], 128  }
  0x7a   :  { %525 = vsyncadd [#allocation4], 4294967168 }
  0x7b   :  { %526 = dma.done.wait [#allocation9], 128  }
  0x7c   :  { %527 = vsyncadd [#allocation9], 4294967168 }
  0x7d   :  { %402 = vsyncpa [#allocation3], 1 }
  0x7e   :  { %403 = vsyncpa [#allocation6], 1 }
  0x7f   :  { %404 = vsyncpa [#allocation4], 1 }
  0x80   :  { %405 = vsyncpa [#allocation9], 1 }

</bundles_post_ra>
